<compile_context>
chip_gen: v7x
topology: tpu7x:2x2x1
jax: 0.10.0
libtpu: 0.0.40
codegen_flags: <defaults>
</compile_context>

<pallas_src>
import numpy as np
import jax
import jax.numpy as jnp
from jax import lax
from jax.experimental import pallas as pl
from jax.experimental.pallas import tpu as pltpu


def _gfm_kernel(x_ref, c_ref,
                wxT_ref, bx_ref,
                wsT_ref, bs_ref,
                whT_ref, bh_ref,
                o_ref):
    # x_ref: (1, in_nf, T), c_ref: (1, cond_nf, T), o_ref: (1, base_nf, T)
    x = x_ref[0].astype(jnp.float32)       # (in_nf,  T)  channels on sublanes
    cd = c_ref[0].astype(jnp.float32)      # (cond_nf, T)

    # Hoisted weight/bias loads (once per grid step).
    wxT = wxT_ref[...]                     # (base_nf, in_nf)
    wsT = wsT_ref[...]                     # (base_nf, cond_nf)
    whT = whT_ref[...]                     # (base_nf, cond_nf)
    bx = bx_ref[...]                       # (base_nf, 1)
    bs = bs_ref[...]
    bh = bh_ref[...]

    in_nf = x.shape[0]
    cond_nf = cd.shape[0]

    def conv1x1(inp, wT, b, cin):
        # Unrolled VPU broadcast-FMAs over fully packed (base_nf, T) tiles:
        #   acc[c, t] = b[c] + sum_k wT[c, k] * inp[k, t]
        acc = wT[:, 0:1] * inp[0:1, :] + b
        for k in range(1, cin):
            acc = acc + wT[:, k:k + 1] * inp[k:k + 1, :]
        return acc

    feat = conv1x1(x, wxT, bx, in_nf)      # (base_nf, T)
    scale = conv1x1(cd, wsT, bs, cond_nf)  # (base_nf, T)
    shift = conv1x1(cd, whT, bh, cond_nf)  # (base_nf, T)

    # feat*scale + shift + feat  ==  feat*(scale + 1) + shift
    out = feat * (scale + 1.0) + shift

    # Exact GELU (matches torch.nn.GELU default): 0.5*x*(1+erf(x/sqrt(2)))
    out = 0.5 * out * (1.0 + lax.erf(out * 0.7071067811865476))

    o_ref[0] = out.astype(o_ref.dtype)


def _pick_tile_hw(hw):
    """Lane-aligned spatial tile. ~2 MB HBM traffic / step at 32768 pixels."""
    if hw % 128 != 0:
        # Full-extent spatial block is always a legal block shape.
        # TODO(synk): for very large non-128-aligned H*W, pad the spatial axis
        # to a multiple of 128 instead of using a single full-extent block.
        return hw
    return min(hw, 32768)


def gfm_forward(x_nchw, cond_nchw, params, *, tile_hw=None):
    """x_nchw: (N, in_nf, H, W), cond_nchw: (N, cond_nf, H, W). Returns NCHW."""
    wx, bx = params["conv_w"], params["conv_b"]      # (in_nf, base_nf), (base_nf,)
    ws, bs = params["scale_w"], params["scale_b"]    # (cond_nf, base_nf), (base_nf,)
    wh, bh = params["shift_w"], params["shift_b"]    # (cond_nf, base_nf), (base_nf,)

    N, in_nf, H, W = x_nchw.shape
    _, cond_nf, _, _ = cond_nchw.shape
    base_nf = wx.shape[1]
    HW = H * W

    # Free reshapes (no transpose, no extra HBM traffic): NCHW -> (N, C, H*W).
    x3 = x_nchw.reshape(N, in_nf, HW)
    c3 = cond_nchw.reshape(N, cond_nf, HW)

    # Tiny weights: pre-transpose to (Cout, Cin); biases as (Cout, 1) columns.
    wxT = jnp.asarray(wx, jnp.float32).T
    wsT = jnp.asarray(ws, jnp.float32).T
    whT = jnp.asarray(wh, jnp.float32).T
    bx2 = jnp.asarray(bx, jnp.float32).reshape(base_nf, 1)
    bs2 = jnp.asarray(bs, jnp.float32).reshape(base_nf, 1)
    bh2 = jnp.asarray(bh, jnp.float32).reshape(base_nf, 1)

    if tile_hw is None:
        tile_hw = _pick_tile_hw(HW)

    grid = (N, pl.cdiv(HW, tile_hw))

    def spatial_spec(c):
        return pl.BlockSpec((1, c, tile_hw), lambda n, i: (n, 0, i))

    def small_spec(r, c):
        return pl.BlockSpec((r, c), lambda n, i: (0, 0))

    out3 = pl.pallas_call(
        _gfm_kernel,
        out_shape=jax.ShapeDtypeStruct((N, base_nf, HW), x_nchw.dtype),
        grid=grid,
        in_specs=[
            spatial_spec(in_nf),                 # x tile        (1, in_nf,  T)
            spatial_spec(cond_nf),               # cond tile     (1, cond_nf, T)
            small_spec(base_nf, in_nf),          # conv  weight^T
            small_spec(base_nf, 1),              # conv  bias
            small_spec(base_nf, cond_nf),        # scale weight^T
            small_spec(base_nf, 1),              # scale bias
            small_spec(base_nf, cond_nf),        # shift weight^T
            small_spec(base_nf, 1),              # shift bias
        ],
        out_specs=spatial_spec(base_nf),         # out tile      (1, base_nf, T)
        compiler_params=pltpu.CompilerParams(
            dimension_semantics=("parallel", "parallel")),
    )(x3, c3, wxT, bx2, wsT, bs2, whT, bh2)

    return out3.reshape(N, base_nf, H, W)


def _ref_forward(x, cond, params):
    """Pure-JAX reference (same math as the PyTorch module)."""
    def conv1x1(inp, w, b):
        # inp: (N, Cin, H, W); w: (Cin, Cout)
        return jnp.einsum("nchw,cd->ndhw", inp, w) + b[None, :, None, None]

    feat = conv1x1(x, params["conv_w"], params["conv_b"])
    scale = conv1x1(cond, params["scale_w"], params["scale_b"])
    shift = conv1x1(cond, params["shift_w"], params["shift_b"])
    out = feat * scale + shift + feat
    return 0.5 * out * (1.0 + lax.erf(out * 0.7071067811865476))


if __name__ == "__main__":
    # Small shapes consistent with the module's forward.
    N, H, W = 2, 16, 16
    cond_nf, in_nf, base_nf = 4, 4, 8

    key = jax.random.PRNGKey(0)
    kx, kc, k1, k2, k3, k4, k5, k6 = jax.random.split(key, 8)

    x = jax.random.normal(kx, (N, in_nf, H, W), dtype=jnp.float32)
    cond = jax.random.normal(kc, (N, cond_nf, H, W), dtype=jnp.float32)

    # Deterministic parameter init (Conv2d 1x1 weights stored as (Cin, Cout)).
    params = {
        "conv_w":  0.1 * jax.random.normal(k1, (in_nf, base_nf), dtype=jnp.float32),
        "conv_b":  0.01 * jax.random.normal(k2, (base_nf,), dtype=jnp.float32),
        "scale_w": 0.1 * jax.random.normal(k3, (cond_nf, base_nf), dtype=jnp.float32),
        "scale_b": 0.01 * jax.random.normal(k4, (base_nf,), dtype=jnp.float32),
        "shift_w": 0.1 * jax.random.normal(k5, (cond_nf, base_nf), dtype=jnp.float32),
        "shift_b": 0.01 * jax.random.normal(k6, (base_nf,), dtype=jnp.float32),
    }

    out = gfm_forward(x, cond, params)
    out = jax.block_until_ready(out)

    ref = jax.block_until_ready(_ref_forward(x, cond, params))
    assert out.shape == (N, base_nf, H, W)
    np.testing.assert_allclose(np.asarray(out), np.asarray(ref), rtol=1e-5, atol=1e-5)

    print("KERNEL_OK")
</pallas_src>

<mosaic_0001>
module attributes {stable_mosaic.version = 11 : i64} {
  func.func @_gfm_kernel(%arg0: i32, %arg1: i32, %arg2: memref<1x4x256xf32, #tpu.memory_space<vmem>>, %arg3: memref<1x4x256xf32, #tpu.memory_space<vmem>>, %arg4: memref<8x4xf32, #tpu.memory_space<vmem>>, %arg5: memref<8x1xf32, #tpu.memory_space<vmem>>, %arg6: memref<8x4xf32, #tpu.memory_space<vmem>>, %arg7: memref<8x1xf32, #tpu.memory_space<vmem>>, %arg8: memref<8x4xf32, #tpu.memory_space<vmem>>, %arg9: memref<8x1xf32, #tpu.memory_space<vmem>>, %arg10: memref<1x8x256xf32, #tpu.memory_space<vmem>>) attributes {dimension_semantics = [#tpu.dimension_semantics<parallel>, #tpu.dimension_semantics<parallel>], iteration_bounds = array<i64: 2, 1>, scalar_prefetch = 0 : i64, scratch_operands = 0 : i64, tpu.core_type = #tpu.core_type<tc>, window_params = [{transform_indices = @transform_0, window_bounds = array<i64: 1, 4, 256>}, {transform_indices = @transform_1, window_bounds = array<i64: 1, 4, 256>}, {pipeline_mode = #tpu.pipeline_mode<synchronous>, transform_indices = @transform_2, window_bounds = array<i64: 8, 4>}, {pipeline_mode = #tpu.pipeline_mode<synchronous>, transform_indices = @transform_3, window_bounds = array<i64: 8, 1>}, {pipeline_mode = #tpu.pipeline_mode<synchronous>, transform_indices = @transform_4, window_bounds = array<i64: 8, 4>}, {pipeline_mode = #tpu.pipeline_mode<synchronous>, transform_indices = @transform_5, window_bounds = array<i64: 8, 1>}, {pipeline_mode = #tpu.pipeline_mode<synchronous>, transform_indices = @transform_6, window_bounds = array<i64: 8, 4>}, {pipeline_mode = #tpu.pipeline_mode<synchronous>, transform_indices = @transform_7, window_bounds = array<i64: 8, 1>}, {transform_indices = @transform_8, window_bounds = array<i64: 1, 8, 256>}]} {
    %c0 = arith.constant 0 : index
    %c0_0 = arith.constant 0 : index
    %c0_1 = arith.constant 0 : index
    %0 = vector.load %arg2[%c0, %c0_0, %c0_1] : memref<1x4x256xf32, #tpu.memory_space<vmem>>, vector<1x4x256xf32>
    %1 = vector.shape_cast %0 : vector<1x4x256xf32> to vector<4x256xf32>
    %c0_2 = arith.constant 0 : index
    %c0_3 = arith.constant 0 : index
    %c0_4 = arith.constant 0 : index
    %2 = vector.load %arg3[%c0_2, %c0_3, %c0_4] : memref<1x4x256xf32, #tpu.memory_space<vmem>>, vector<1x4x256xf32>
    %3 = vector.shape_cast %2 : vector<1x4x256xf32> to vector<4x256xf32>
    %c0_5 = arith.constant 0 : index
    %c0_6 = arith.constant 0 : index
    %4 = vector.load %arg4[%c0_5, %c0_6] : memref<8x4xf32, #tpu.memory_space<vmem>>, vector<8x4xf32>
    %c0_7 = arith.constant 0 : index
    %c0_8 = arith.constant 0 : index
    %5 = vector.load %arg6[%c0_7, %c0_8] : memref<8x4xf32, #tpu.memory_space<vmem>>, vector<8x4xf32>
    %c0_9 = arith.constant 0 : index
    %c0_10 = arith.constant 0 : index
    %6 = vector.load %arg8[%c0_9, %c0_10] : memref<8x4xf32, #tpu.memory_space<vmem>>, vector<8x4xf32>
    %c0_11 = arith.constant 0 : index
    %c0_12 = arith.constant 0 : index
    %7 = vector.load %arg5[%c0_11, %c0_12] : memref<8x1xf32, #tpu.memory_space<vmem>>, vector<8x1xf32>
    %c0_13 = arith.constant 0 : index
    %c0_14 = arith.constant 0 : index
    %8 = vector.load %arg7[%c0_13, %c0_14] : memref<8x1xf32, #tpu.memory_space<vmem>>, vector<8x1xf32>
    %c0_15 = arith.constant 0 : index
    %c0_16 = arith.constant 0 : index
    %9 = vector.load %arg9[%c0_15, %c0_16] : memref<8x1xf32, #tpu.memory_space<vmem>>, vector<8x1xf32>
    %10 = vector.extract_strided_slice %4 {offsets = [0, 0], sizes = [8, 1], strides = [1, 1]} : vector<8x4xf32> to vector<8x1xf32>
    %11 = vector.extract_strided_slice %1 {offsets = [0, 0], sizes = [1, 256], strides = [1, 1]} : vector<4x256xf32> to vector<1x256xf32>
    %12 = vector.broadcast %10 : vector<8x1xf32> to vector<8x256xf32>
    %13 = vector.broadcast %11 : vector<1x256xf32> to vector<8x256xf32>
    %14 = arith.mulf %12, %13 : vector<8x256xf32>
    %15 = vector.broadcast %7 : vector<8x1xf32> to vector<8x256xf32>
    %16 = arith.addf %14, %15 : vector<8x256xf32>
    %17 = vector.extract_strided_slice %4 {offsets = [0, 1], sizes = [8, 1], strides = [1, 1]} : vector<8x4xf32> to vector<8x1xf32>
    %18 = vector.extract_strided_slice %1 {offsets = [1, 0], sizes = [1, 256], strides = [1, 1]} : vector<4x256xf32> to vector<1x256xf32>
    %19 = vector.broadcast %17 : vector<8x1xf32> to vector<8x256xf32>
    %20 = vector.broadcast %18 : vector<1x256xf32> to vector<8x256xf32>
    %21 = arith.mulf %19, %20 : vector<8x256xf32>
    %22 = arith.addf %16, %21 : vector<8x256xf32>
    %23 = vector.extract_strided_slice %4 {offsets = [0, 2], sizes = [8, 1], strides = [1, 1]} : vector<8x4xf32> to vector<8x1xf32>
    %24 = vector.extract_strided_slice %1 {offsets = [2, 0], sizes = [1, 256], strides = [1, 1]} : vector<4x256xf32> to vector<1x256xf32>
    %25 = vector.broadcast %23 : vector<8x1xf32> to vector<8x256xf32>
    %26 = vector.broadcast %24 : vector<1x256xf32> to vector<8x256xf32>
    %27 = arith.mulf %25, %26 : vector<8x256xf32>
    %28 = arith.addf %22, %27 : vector<8x256xf32>
    %29 = vector.extract_strided_slice %4 {offsets = [0, 3], sizes = [8, 1], strides = [1, 1]} : vector<8x4xf32> to vector<8x1xf32>
    %30 = vector.extract_strided_slice %1 {offsets = [3, 0], sizes = [1, 256], strides = [1, 1]} : vector<4x256xf32> to vector<1x256xf32>
    %31 = vector.broadcast %29 : vector<8x1xf32> to vector<8x256xf32>
    %32 = vector.broadcast %30 : vector<1x256xf32> to vector<8x256xf32>
    %33 = arith.mulf %31, %32 : vector<8x256xf32>
    %34 = arith.addf %28, %33 : vector<8x256xf32>
    %35 = vector.extract_strided_slice %5 {offsets = [0, 0], sizes = [8, 1], strides = [1, 1]} : vector<8x4xf32> to vector<8x1xf32>
    %36 = vector.extract_strided_slice %3 {offsets = [0, 0], sizes = [1, 256], strides = [1, 1]} : vector<4x256xf32> to vector<1x256xf32>
    %37 = vector.broadcast %35 : vector<8x1xf32> to vector<8x256xf32>
    %38 = vector.broadcast %36 : vector<1x256xf32> to vector<8x256xf32>
    %39 = arith.mulf %37, %38 : vector<8x256xf32>
    %40 = vector.broadcast %8 : vector<8x1xf32> to vector<8x256xf32>
    %41 = arith.addf %39, %40 : vector<8x256xf32>
    %42 = vector.extract_strided_slice %5 {offsets = [0, 1], sizes = [8, 1], strides = [1, 1]} : vector<8x4xf32> to vector<8x1xf32>
    %43 = vector.extract_strided_slice %3 {offsets = [1, 0], sizes = [1, 256], strides = [1, 1]} : vector<4x256xf32> to vector<1x256xf32>
    %44 = vector.broadcast %42 : vector<8x1xf32> to vector<8x256xf32>
    %45 = vector.broadcast %43 : vector<1x256xf32> to vector<8x256xf32>
    %46 = arith.mulf %44, %45 : vector<8x256xf32>
    %47 = arith.addf %41, %46 : vector<8x256xf32>
    %48 = vector.extract_strided_slice %5 {offsets = [0, 2], sizes = [8, 1], strides = [1, 1]} : vector<8x4xf32> to vector<8x1xf32>
    %49 = vector.extract_strided_slice %3 {offsets = [2, 0], sizes = [1, 256], strides = [1, 1]} : vector<4x256xf32> to vector<1x256xf32>
    %50 = vector.broadcast %48 : vector<8x1xf32> to vector<8x256xf32>
    %51 = vector.broadcast %49 : vector<1x256xf32> to vector<8x256xf32>
    %52 = arith.mulf %50, %51 : vector<8x256xf32>
    %53 = arith.addf %47, %52 : vector<8x256xf32>
    %54 = vector.extract_strided_slice %5 {offsets = [0, 3], sizes = [8, 1], strides = [1, 1]} : vector<8x4xf32> to vector<8x1xf32>
    %55 = vector.extract_strided_slice %3 {offsets = [3, 0], sizes = [1, 256], strides = [1, 1]} : vector<4x256xf32> to vector<1x256xf32>
    %56 = vector.broadcast %54 : vector<8x1xf32> to vector<8x256xf32>
    %57 = vector.broadcast %55 : vector<1x256xf32> to vector<8x256xf32>
    %58 = arith.mulf %56, %57 : vector<8x256xf32>
    %59 = arith.addf %53, %58 : vector<8x256xf32>
    %60 = vector.extract_strided_slice %6 {offsets = [0, 0], sizes = [8, 1], strides = [1, 1]} : vector<8x4xf32> to vector<8x1xf32>
    %61 = vector.extract_strided_slice %3 {offsets = [0, 0], sizes = [1, 256], strides = [1, 1]} : vector<4x256xf32> to vector<1x256xf32>
    %62 = vector.broadcast %60 : vector<8x1xf32> to vector<8x256xf32>
    %63 = vector.broadcast %61 : vector<1x256xf32> to vector<8x256xf32>
    %64 = arith.mulf %62, %63 : vector<8x256xf32>
    %65 = vector.broadcast %9 : vector<8x1xf32> to vector<8x256xf32>
    %66 = arith.addf %64, %65 : vector<8x256xf32>
    %67 = vector.extract_strided_slice %6 {offsets = [0, 1], sizes = [8, 1], strides = [1, 1]} : vector<8x4xf32> to vector<8x1xf32>
    %68 = vector.extract_strided_slice %3 {offsets = [1, 0], sizes = [1, 256], strides = [1, 1]} : vector<4x256xf32> to vector<1x256xf32>
    %69 = vector.broadcast %67 : vector<8x1xf32> to vector<8x256xf32>
    %70 = vector.broadcast %68 : vector<1x256xf32> to vector<8x256xf32>
    %71 = arith.mulf %69, %70 : vector<8x256xf32>
    %72 = arith.addf %66, %71 : vector<8x256xf32>
    %73 = vector.extract_strided_slice %6 {offsets = [0, 2], sizes = [8, 1], strides = [1, 1]} : vector<8x4xf32> to vector<8x1xf32>
    %74 = vector.extract_strided_slice %3 {offsets = [2, 0], sizes = [1, 256], strides = [1, 1]} : vector<4x256xf32> to vector<1x256xf32>
    %75 = vector.broadcast %73 : vector<8x1xf32> to vector<8x256xf32>
    %76 = vector.broadcast %74 : vector<1x256xf32> to vector<8x256xf32>
    %77 = arith.mulf %75, %76 : vector<8x256xf32>
    %78 = arith.addf %72, %77 : vector<8x256xf32>
    %79 = vector.extract_strided_slice %6 {offsets = [0, 3], sizes = [8, 1], strides = [1, 1]} : vector<8x4xf32> to vector<8x1xf32>
    %80 = vector.extract_strided_slice %3 {offsets = [3, 0], sizes = [1, 256], strides = [1, 1]} : vector<4x256xf32> to vector<1x256xf32>
    %81 = vector.broadcast %79 : vector<8x1xf32> to vector<8x256xf32>
    %82 = vector.broadcast %80 : vector<1x256xf32> to vector<8x256xf32>
    %83 = arith.mulf %81, %82 : vector<8x256xf32>
    %84 = arith.addf %78, %83 : vector<8x256xf32>
    %cst = arith.constant 1.000000e+00 : f32
    %85 = vector.broadcast %cst : f32 to vector<8x256xf32>
    %86 = arith.addf %59, %85 : vector<8x256xf32>
    %87 = arith.mulf %34, %86 : vector<8x256xf32>
    %88 = arith.addf %87, %84 : vector<8x256xf32>
    %cst_17 = arith.constant 5.000000e-01 : f32
    %89 = vector.broadcast %cst_17 : f32 to vector<8x256xf32>
    %90 = arith.mulf %89, %88 : vector<8x256xf32>
    %cst_18 = arith.constant 0.707106769 : f32
    %91 = vector.broadcast %cst_18 : f32 to vector<8x256xf32>
    %92 = arith.mulf %88, %91 : vector<8x256xf32>
    %93 = math.erf %92 : vector<8x256xf32>
    %cst_19 = arith.constant 1.000000e+00 : f32
    %94 = vector.broadcast %cst_19 : f32 to vector<8x256xf32>
    %95 = arith.addf %94, %93 : vector<8x256xf32>
    %96 = arith.mulf %90, %95 : vector<8x256xf32>
    %c0_20 = arith.constant 0 : index
    %c0_21 = arith.constant 0 : index
    %c0_22 = arith.constant 0 : index
    %97 = vector.load %arg10[%c0_20, %c0_21, %c0_22] : memref<1x8x256xf32, #tpu.memory_space<vmem>>, vector<1x8x256xf32>
    %98 = vector.shape_cast %97 : vector<1x8x256xf32> to vector<8x256xf32>
    %99 = vector.shape_cast %96 : vector<8x256xf32> to vector<1x8x256xf32>
    tpu.vector_store %arg10[%c0_20, %c0_21, %c0_22], %99 {strides = array<i32>} : memref<1x8x256xf32, #tpu.memory_space<vmem>>, vector<1x8x256xf32>,
    return
  }
  func.func @transform_0(%arg0: i32, %arg1: i32) -> (i32, i32, i32) {
    %c0_i32 = arith.constant 0 : i32
    %c0_i32_0 = arith.constant 0 : i32
    return %arg0, %c0_i32, %arg1 : i32, i32, i32
  }
  func.func @transform_1(%arg0: i32, %arg1: i32) -> (i32, i32, i32) {
    %c0_i32 = arith.constant 0 : i32
    %c0_i32_0 = arith.constant 0 : i32
    return %arg0, %c0_i32, %arg1 : i32, i32, i32
  }
  func.func @transform_2(%arg0: i32, %arg1: i32) -> (i32, i32) {
    %c0_i32 = arith.constant 0 : i32
    %c0_i32_0 = arith.constant 0 : i32
    %c0_i32_1 = arith.constant 0 : i32
    return %c0_i32, %c0_i32_0 : i32, i32
  }
  func.func @transform_3(%arg0: i32, %arg1: i32) -> (i32, i32) {
    %c0_i32 = arith.constant 0 : i32
    %c0_i32_0 = arith.constant 0 : i32
    %c0_i32_1 = arith.constant 0 : i32
    return %c0_i32, %c0_i32_0 : i32, i32
  }
  func.func @transform_4(%arg0: i32, %arg1: i32) -> (i32, i32) {
    %c0_i32 = arith.constant 0 : i32
    %c0_i32_0 = arith.constant 0 : i32
    %c0_i32_1 = arith.constant 0 : i32
    return %c0_i32, %c0_i32_0 : i32, i32
  }
  func.func @transform_5(%arg0: i32, %arg1: i32) -> (i32, i32) {
    %c0_i32 = arith.constant 0 : i32
    %c0_i32_0 = arith.constant 0 : i32
    %c0_i32_1 = arith.constant 0 : i32
    return %c0_i32, %c0_i32_0 : i32, i32
  }
  func.func @transform_6(%arg0: i32, %arg1: i32) -> (i32, i32) {
    %c0_i32 = arith.constant 0 : i32
    %c0_i32_0 = arith.constant 0 : i32
    %c0_i32_1 = arith.constant 0 : i32
    return %c0_i32, %c0_i32_0 : i32, i32
  }
  func.func @transform_7(%arg0: i32, %arg1: i32) -> (i32, i32) {
    %c0_i32 = arith.constant 0 : i32
    %c0_i32_0 = arith.constant 0 : i32
    %c0_i32_1 = arith.constant 0 : i32
    return %c0_i32, %c0_i32_0 : i32, i32
  }
  func.func @transform_8(%arg0: i32, %arg1: i32) -> (i32, i32, i32) {
    %c0_i32 = arith.constant 0 : i32
    %c0_i32_0 = arith.constant 0 : i32
    return %arg0, %c0_i32, %arg1 : i32, i32, i32
  }
}

</mosaic_0001>

<bundles_post_ra>
// kernel: tpu_custom_call.1
= control target key start
LH: loop header
LB: loop body
LE: loop exit
PB: predicated region body
PF: predicated region fallthrough
CT: control target
= control target key end

     0   :  { %13 = vsyncpa [#allocation3], 0  ;;  %s1130_s0 = inlined_call_operand.vmem [shape: f32[2,4,256], index: 0, kind: input, shape index: {}]   ;;  %s1131_s1 = inlined_call_operand.vmem [shape: f32[2,4,256], index: 1, kind: input, shape index: {}]   ;;  %s1132_s2 = inlined_call_operand.vmem [shape: f32[8,4], index: 2, kind: input, shape index: {}]   ;;  %s1133_s3 = inlined_call_operand.vmem [shape: f32[8,1], index: 3, kind: input, shape index: {}]   ;;  %s1134_s4 = inlined_call_operand.vmem [shape: f32[8,4], index: 4, kind: input, shape index: {}]   ;;  %s1135_s5 = inlined_call_operand.vmem [shape: f32[8,1], index: 5, kind: input, shape index: {}]   ;;  %s1136_s6 = inlined_call_operand.vmem [shape: f32[8,4], index: 6, kind: input, shape index: {}]   ;;  %s1137_s7 = inlined_call_operand.vmem [shape: f32[8,1], index: 7, kind: input, shape index: {}]   ;;  %s1138_s8 = inlined_call_operand.hbm [shape: f32[2,8,256], index: 8, kind: output, shape index: {}]  }
   0x1   :  { %15 = vsyncpa [#allocation3 + $0x1], 0  ;;  %s989_s27 = smov 0   ;;  %s991_s28 = smov 0  }
   0x2   :  { %s993_s29 = smov 0   ;;  %s995_s30 = smov 0  }
   0x3   :  { %s997_s9 = smov 0   ;;  %s999_s10 = smov 0  }
   0x4 LB: > { %s768_s11 = sadd.s32 4294967295, %s937_s10   ;;  %s769_s12 = sadd.s32 4294967294, %s937_s10   ;;  %s937_s10 = sphi %s999_s10, %s21_s10   ;;  %s933_s9 = sphi %s997_s9, %s1145_s9   ;;  %s929_s30 = sphi %s995_s30, %s1144_s30   ;;  %s925_s29 = sphi %s993_s29, %s1143_s29   ;;  %s921_s28 = sphi %s991_s28, %s1142_s28   ;;  %s917_s27 = sphi %s989_s27, %s1141_s27  }
   0x5   : > { %s33_s13 = sadd.s32 1, %s933_s9  ;;  %s224_s14 = sadd.s32 1, %s925_s29 }
   0x6   : > { %p35_p0 = scmp.ge.s32.totalorder %s33_s13, 2  ;;  %p234_p1 = scmp.ne.s32.totalorder %s925_s29, %s921_s28 }
   0x7   : > { %p235_p2 = scmp.eq.s32.totalorder %s768_s11, 1  ;;  %p240_p3 = scmp.ne.s32.totalorder %s921_s28, %s917_s27 }
   0x8   : > { %s1147_s13 = smov (%p35_p0, %s33_s13), 0  ;;  %p241_p5 = scmp.eq.s32.totalorder %s769_s12, 1 }
   0x9   : > { %p1029_p4 = por %p235_p2, %p234_p1  ;;  %s219_s16 = ssub.s32 %s933_s9, %s1147_s13 }
   0xa   : > { %p772_p6 = scmp.ge.s32.totalorder %s937_s10, 1  ;;  %p222_p7 = scmp.eq.s32.totalorder %s219_s16, 0 }
   0xb   : > { %p1036_p8 = por %p241_p5, %p240_p3  ;;  %p303_p9 = scmp.lt.s32.totalorder %s937_s10, 3 }
   0xc   : > { %s1042_s18 = scalar_select %p222_p7, %s925_s29, %s224_s14  }
   0xd   : > { %p304_p10 = pnand %p772_p6, %p303_p9 }
   0xe   : > { %v377_v0 = vld [vmem:[%s1135_s5] sm:$0xff] (!%p304_p10)  ;;  %v939_v2 = vmov (!%p304_p10), 0   ;;  %v940_v4 = vmov (!%p304_p10), 1   ;;  %v941_v7 = vmov (!%p304_p10), 2   ;;  %v942_v8 = vmov (!%p304_p10), 3   ;;  %p351_p11 = scmp.lt.s32.totalorder (!%p304_p10), %s929_s30, 1 }
   0xf   : > { %307 = sbr.rel (%p304_p10) target bundleno = 218 (0xda), region = 52  ;;  %v374_v1 = vld [vmem:[%s1134_s4] sm:$0xff] (!%p304_p10)  ;;  %846 = vset.pattern.permute.xlu1 (!%p304_p10), %v939_v2  ;;  %845 = vset.pattern.permute.xlu0 (!%p304_p10), %v939_v2  ;;  %v385_v12 = vlaneseq (!%p304_p10)  ;;  %s347_s11 = sand.u32 (!%p304_p10), 1, %s921_s28  }
  0x10   : > { %518 = vperm.xlu1 (!%p304_p10), %846, %v377_v0   ;;  %492 = vperm.xlu0 (!%p304_p10), %845, %v374_v1   ;;  %v373_v3 = vld [vmem:[%s1132_s2] sm:$0xff] (!%p304_p10)  ;;  %s773_s12 = sshll.u32 (!%p304_p10), %s347_s11, 4  ;;  %s785_s14 = sshll.u32 (!%p304_p10), %s929_s30, 8 }
  0x11   : > { %v376_v5 = vld [vmem:[%s1133_s3] sm:$0xff] (!%p304_p10)  ;;  %v386_v14 = vshrl.u32 (!%p304_p10), %v385_v12, 7  ;;  %s349_s16 = scalar_lea.vmem (!%p304_p10), [#allocation2], %s773_s12  ;;  %s1083_s22 = scalar_lea.hbm (!%p304_p10), %s1138_s8, %s785_s14 }
  0x12   : > { %v375_v6 = vld [vmem:[%s1136_s6] sm:$0xff] (!%p304_p10)  ;;  %s943_s24 = smov (!%p304_p10), [#allocation2]  }
  0x13   : > { %v378_v9 = vld [vmem:[%s1137_s7] sm:$0xff] (!%p304_p10)  ;;  %v387_v16 = vsub.s32 (!%p304_p10), 0, %v386_v14  ;;  %v391_v17 = vsub.s32 (!%p304_p10), 4, %v386_v14  ;;  %v418_v22 = vsub.s32 (!%p304_p10), 1, %v386_v14  ;;  %v422_v23 = vsub.s32 (!%p304_p10), 5, %v386_v14  ;;  %s863_s25 = sshll.u32 (!%p304_p10), %s943_s24, 4  ;;  %s864_s25 = int_to_ptr.vmem [resolvable:$false] %s863_s25 }
  0x14   : > { %847 = vset.pattern.permute.xlu1 (!%p304_p10), %v940_v4  ;;  %381 = vperm.xlu0 (!%p304_p10), %845, %v373_v3   ;;  %v444_v28 = vsub.s32 (!%p304_p10), 2, %v386_v14  ;;  %v448_v29 = vsub.s32 (!%p304_p10), 6, %v386_v14  ;;  %v470_v34 = vsub.s32 (!%p304_p10), 3, %v386_v14  ;;  %v474_v35 = vsub.s32 (!%p304_p10), 7, %v386_v14 }
  0x15   : > { %524 = vperm.xlu1 (!%p304_p10), %847, %v374_v1  }
  0x16   : > { %s352_s19 = scalar_select %p351_p11, %s929_s30, 1 }
  0x18   : > { %407 = vperm.xlu0 %845, %v376_v5   ;;  %s783_s20 = sshll.u32 %s352_s19, 3  ;;  %s674_s19 = sshll.u32 %s349_s16, 4  ;;  %s1085_s19 = int_to_ptr.vmem [resolvable:$true] %s674_s19 }
  0x19   : > { %413 = vperm.xlu1 %847, %v373_v3   ;;  %s358_s23 = scalar_lea.vmem %s1130_s0, %s783_s20  ;;  %s368_s26 = scalar_lea.vmem %s1131_s1, %s783_s20 }
  0x1a   : > { %v371_v18 = vld [vmem:[%s358_s23] sm:$0xff]  ;;  %s658_s23 = scalar_lea.sflag [#allocation3], %s347_s11  ;;  %s859_s30 = scalar_lea.vmem %s1085_s19, 256 }
  0x1b   : > { %v372_v21 = vld [vmem:[%s368_s26] sm:$0xff]  ;;  %v388_v24 = vrot.slane %v371_v18, %v387_v16  ;;  %v392_v25 = vrot.slane %v371_v18, %v391_v17  ;;  %v419_v38 = vrot.slane %v371_v18, %v418_v22  ;;  %v423_v39 = vrot.slane %v371_v18, %v422_v23  ;;  %p860_p12 = scmp.ne.s32.totalorder %s1085_s19, %s859_s30  ;;  %s865_s26 = scalar_lea.vmem %s864_s25, 512 }
  0x1c   : > { %848 = vset.pattern.permute.xlu0 %v941_v7  ;;  %v499_v26 = vrot.slane %v372_v21, %v387_v16  ;;  %v503_v27 = vrot.slane %v372_v21, %v391_v17  ;;  %v530_v31 = vrot.slane %v372_v21, %v418_v22  ;;  %v534_v32 = vrot.slane %v372_v21, %v422_v23  ;;  %p866_p1 = scmp.lt.s32.totalorder %s1085_s19, %s864_s25  ;;  %p867_p2 = scmp.lt.s32.totalorder %s865_s26, %s859_s30 }
  0x1d   : > { %849 = vset.pattern.permute.xlu1 %v939_v2  ;;  %550 = vperm.xlu0 %848, %v374_v1   ;;  %v398_v36 = vrot.slane %v388_v24, %v387_v16  ;;  %v402_v37 = vrot.slane %v392_v25, %v387_v16  ;;  %v556_v42 = vrot.slane %v372_v21, %v444_v28  ;;  %p861_p13 = pnand %p860_p12, %p1029_p4 }
  0x1e   : > { %603 = vperm.xlu1 %849, %v375_v6   ;;  %v509_v40 = vrot.slane %v499_v26, %v387_v16  ;;  %v513_v41 = vrot.slane %v503_v27, %v387_v16  ;;  %v560_v43 = vrot.slane %v372_v21, %v448_v29  ;;  %v445_v44 = vrot.slane %v371_v18, %v444_v28  ;;  %p868_p3 = por %p867_p2, %p866_p1 }
  0x1f   : > { %v449_v45 = vrot.slane %v371_v18, %v448_v29  ;;  %v540_v46 = vrot.slane %v530_v31, %v418_v22  ;;  %v544_v47 = vrot.slane %v534_v32, %v418_v22  ;;  %v582_v48 = vrot.slane %v372_v21, %v470_v34  ;;  %p862_p0 = pneg %p861_p13 }
  0x20   : > { %v586_v49 = vrot.slane %v372_v21, %v474_v35  ;;  %v429_v53 = vrot.slane %v419_v38, %v418_v22  ;;  %v433_v54 = vrot.slane %v423_v39, %v418_v22  ;;  %v566_v57 = vrot.slane %v556_v42, %v444_v28 }
  0x21   : > { %851 = vset.pattern.permute.xlu0 %v942_v8  ;;  %v570_v58 = vrot.slane %v560_v43, %v444_v28  ;;  %v455_v60 = vrot.slane %v445_v44, %v444_v28  ;;  %v459_v61 = vrot.slane %v449_v45, %v444_v28  ;;  %v471_v62 = vrot.slane %v371_v18, %v470_v34  ;;  %p869_p5 = pnand %p868_p3, %p862_p0 }
  0x22   : > { %850 = vset.pattern.permute.xlu1 %v941_v7  ;;  %576 = vperm.xlu0 %851, %v374_v1   ;;  %v475_v63 = vrot.slane %v371_v18, %v474_v35 }
  0x23   : > { %439 = vperm.xlu1 %850, %v373_v3   ;;  %v481_v17 = vrot.slane %v471_v62, %v470_v34 }
  0x24   : > { %v485_v21 = vrot.slane %v475_v63, %v470_v34 }
  0x26   : > { %465 = vperm.xlu0 %851, %v373_v3   ;;  %v596_v3 = vrot.slane %v586_v49, %v470_v34 }
  0x27   : > { %852 = vset.pattern.permute.xlu1 %v939_v2  ;;  %v592_v2 = vrot.slane %v582_v48, %v470_v34 }
  0x28   : > { %610 = vperm.xlu1 %852, %v378_v9  }
  0x2a   : > { %632 = vperm.xlu0 %851, %v375_v6  }
  0x2c   : > { %853 = vset.pattern.permute.xlu1 %v940_v4 }
  0x2d   : > { %616 = vperm.xlu1 %853, %v375_v6  }
  0x31   : > { %854 = vset.pattern.permute.xlu1 %v941_v7 }
  0x32   : > { %624 = vperm.xlu1 %854, %v375_v6  }
  0x8f   : > { %v1063_v10 = vpop.permute.xlu1 %518  ;;  %v493_v11 = vpop.permute.xlu0 %492 }
  0x90   : > { %v514_v55 = vmul.f32 %v509_v40, %v493_v11  ;;  %v515_v56 = vmul.f32 %v513_v41, %v493_v11 }
  0x92   : > { %v521_v9 = vadd.f32 %v1063_v10, %v514_v55  ;;  %v522_v11 = vadd.f32 %v1063_v10, %v515_v56 }
  0x93   : > { %v382_v13 = vpop.permute.xlu0 %381 }
  0x94   : > { %v525_v15 = vpop.permute.xlu1 %524  ;;  %v403_v51 = vmul.f32 %v398_v36, %v382_v13  ;;  %v404_v52 = vmul.f32 %v402_v37, %v382_v13 }
  0x95   : > { %v545_v0 = vmul.f32 %v540_v46, %v525_v15  ;;  %v546_v1 = vmul.f32 %v544_v47, %v525_v15 }
  0x97   : > { %v408_v20 = vpop.permute.xlu0 %407  ;;  %v547_v18 = vadd.f32 %v545_v0, %v521_v9  ;;  %v548_v22 = vadd.f32 %v546_v1, %v522_v11 }
  0x98   : > { %v414_v19 = vpop.permute.xlu1 %413  ;;  %v410_v6 = vadd.f32 %v408_v20, %v403_v51  ;;  %v411_v7 = vadd.f32 %v408_v20, %v404_v52 }
  0x99   : > { %v434_v4 = vmul.f32 %v429_v53, %v414_v19  ;;  %v435_v5 = vmul.f32 %v433_v54, %v414_v19 }
  0x9b   : > { %v436_v23 = vadd.f32 %v434_v4, %v410_v6  ;;  %v437_v24 = vadd.f32 %v435_v5, %v411_v7 }
  0x9c   : > { %v551_v33 = vpop.permute.xlu0 %550 }
  0x9d   : > { %v1072_v30 = vpop.permute.xlu1 %603  ;;  %v571_v12 = vmul.f32 %v566_v57, %v551_v33  ;;  %v572_v13 = vmul.f32 %v570_v58, %v551_v33 }
  0x9e   : > { %v606_v32 = vmul.f32 %v1072_v30, %v509_v40  ;;  %v607_v33 = vmul.f32 %v1072_v30, %v513_v41 }
  0x9f   : > { %v573_v26 = vadd.f32 %v571_v12, %v547_v18  ;;  %v574_v20 = vadd.f32 %v572_v13, %v548_v22 }
  0xa1   : > { %v577_v59 = vpop.permute.xlu0 %576 }
  0xa2   : > { %v440_v50 = vpop.permute.xlu1 %439  ;;  %v597_v25 = vmul.f32 %v592_v2, %v577_v59  ;;  %v598_v19 = vmul.f32 %v596_v3, %v577_v59 }
  0xa3   : > { %v460_v14 = vmul.f32 %v455_v60, %v440_v50  ;;  %v461_v16 = vmul.f32 %v459_v61, %v440_v50 }
  0xa4   : > { %v599_v36 = vadd.f32 %v597_v25, %v573_v26  ;;  %v600_v37 = vadd.f32 %v598_v19, %v574_v20 }
  0xa5   : > { %v466_v15 = vpop.permute.xlu0 %465  ;;  %v462_v28 = vadd.f32 %v460_v14, %v436_v23  ;;  %v463_v29 = vadd.f32 %v461_v16, %v437_v24 }
  0xa6   : > { %v486_v31 = vmul.f32 %v481_v17, %v466_v15  ;;  %v487_v10 = vmul.f32 %v485_v21, %v466_v15  ;;  %v639_v52 = vadd.f32 1.0, %v599_v36  ;;  %v640_v53 = vadd.f32 1.0, %v600_v37 }
  0xa7   : > { %v611_v8 = vpop.permute.xlu1 %610 }
  0xa8   : > { %v613_v38 = vadd.f32 %v611_v8, %v606_v32  ;;  %v614_v39 = vadd.f32 %v611_v8, %v607_v33  ;;  %v488_v42 = vadd.f32 %v486_v31, %v462_v28  ;;  %v489_v43 = vadd.f32 %v487_v10, %v463_v29 }
  0xa9   : > { %v633_v44 = vpop.permute.xlu0 %632 }
  0xaa   : > { %v635_v40 = vmul.f32 %v633_v44, %v592_v2  ;;  %v636_v54 = vmul.f32 %v633_v44, %v596_v3 }
  0xac   : > { %v617_v27 = vpop.permute.xlu1 %616 }
  0xad   : > { %v619_v35 = vmul.f32 %v617_v27, %v540_v46  ;;  %v620_v34 = vmul.f32 %v617_v27, %v544_v47  ;;  %v641_v46 = vmul.f32 %v639_v52, %v488_v42  ;;  %v642_v47 = vmul.f32 %v640_v53, %v489_v43 }
  0xaf   : > { %v621_v48 = vadd.f32 %v619_v35, %v613_v38  ;;  %v622_v49 = vadd.f32 %v620_v34, %v614_v39 }
  0xb1   : > { %v625_v45 = vpop.permute.xlu1 %624 }
  0xb2   : > { %v627_v50 = vmul.f32 %v625_v45, %v566_v57  ;;  %v628_v51 = vmul.f32 %v625_v45, %v570_v58 }
  0xb4   : > { %v629_v30 = vadd.f32 %v627_v50, %v621_v48  ;;  %v630_v41 = vadd.f32 %v628_v51, %v622_v49 }
  0xb6   : > { %v637_v55 = vadd.f32 %v635_v40, %v629_v30  ;;  %v638_v56 = vadd.f32 %v636_v54, %v630_v41 }
  0xb8   : > { %v643_v59 = vadd.f32 %v641_v46, %v637_v55  ;;  %v644_v60 = vadd.f32 %v642_v47, %v638_v56 }
  0xba   : > { %v647_v61 = vmul.f32 0.70710677, %v643_v59  ;;  %v648_v62 = vmul.f32 0.70710677, %v644_v60  ;;  %v645_v63 = vmul.f32 0.5, %v643_v59  ;;  %v646_v1 = vmul.f32 0.5, %v644_v60 }
  0xbc   : > { %855 = verf.f32 %v647_v61 }
  0xbd   : > { %857 = verf.f32 %v648_v62 }
  0xc6   : > { %v856_v57 = vpop.eup %855 }
  0xc7   : > { %v858_v58 = vpop.eup %857  ;;  %v651_v0 = vadd.f32 1.0, %v856_v57 }
  0xc8   : > { %v652_v2 = vadd.f32 1.0, %v858_v58 }
  0xc9   : > { %v653_v3 = vmul.f32 %v651_v0, %v645_v63 }
  0xca   : > { %v654_v4 = vmul.f32 %v652_v2, %v646_v1 }
  0xcb   : > { %655 = vst [vmem:[%s349_s16] sm:$0xff] %v653_v3 }
  0xcc   : > { %656 = vst [vmem:[%s349_s16 + $0x8] sm:$0xff] %v654_v4 }
  0xcd   : > { %872 = shalt.err (!%p869_p5)
}
  0xce   : > { %s873_s11 = scalar_lea.hbm %s1083_s22, 256  ;;  %s877_s16 = scalar_lea.hbm %s1138_s8, 512 }
  0xcf   : > { %p874_p6 = scmp.ne.s32.totalorder %s1083_s22, %s873_s11  ;;  %p878_p10 = scmp.lt.u32.totalorder %s1083_s22, %s1138_s8 }
  0xd0   : > { %p879_p11 = scmp.lt.u32.totalorder %s877_s16, %s873_s11  ;;  %p881_p13 = scmp.lt.u32.totalorder %s873_s11, %s1083_s22 }
  0xd1   : > { %p875_p7 = pnand %p874_p6, %p1029_p4 }
  0xd2   : > { %p880_p12 = por %p879_p11, %p878_p10 }
  0xd3   : > { %p876_p9 = pneg %p875_p7 }
  0xd4   : > { %p882_p0 = por %p881_p13, %p880_p12 }
  0xd6   : > { %p883_p1 = pnand %p882_p0, %p876_p9 }
  0xd8   : > { %886 = shalt.err (!%p883_p1)
}
  0xd9   : > { %786 = dma.vmem_to_hbm [thread:$0]  (%p1029_p4), %s1085_s19, 256, %s1083_s22, %s658_s23  }
  0xda PF: > { %p792_p2 = scmp.ge.s32.totalorder %s937_s10, 2  ;;  %s686_s30 = sand.u32 1, %s917_s27  }
  0xdb   : > { %s687_s24 = scalar_lea.sflag [#allocation3], %s686_s30 }
  0xdc   : > { %p789_p3 = pnand %p792_p2, %p1036_p8 }
  0xde   : > { %912 = dma.done.wait (!%p789_p3), %s687_s24, 256  }
  0xdf   : > { %914 = vsyncadd (!%p789_p3), %s687_s24, 4294967040  ;;  %s21_s10 = sadd.s32 1, %s937_s10   ;;  %s1141_s27 = smov %s921_s28 }
  0xe0   : > { %p18_p5 = scmp.ge.s32.totalorder %s21_s10, 4   ;;  %s1142_s28 = smov %s925_s29 }
  0xe1   : > { %s1143_s29 = smov %s1042_s18  ;;  %s1144_s30 = smov %s933_s9 }
  0xe2   : > { %s1145_s9 = smov %s1147_s13  ;;  %20 = sbr.rel (!%p18_p5) target bundleno = 4 (0x4), region = 90 }
  0xe9   :  { %692 = vsyncpa [#allocation3], 1 }
  0xea   :  { %694 = vsyncpa [#allocation3 + $0x1], 1 }

</bundles_post_ra>
